<compile_context>
chip_gen: v5e
topology: v5e:2x2
jax: 0.10.0
libtpu: 0.0.40
codegen_flags: <defaults>
</compile_context>

<pallas_src>
import math
from functools import partial

import jax
import jax.numpy as jnp
from jax.experimental import pallas as pl
from jax.experimental.pallas import tpu as pltpu

# TODO(synk): serve_input._call_load_sample (base64/JSON/image decoding of the raw
# serve payload) is host-side string processing with no Pallas equivalent; kernels
# start from the already-decoded numeric sample.

_BLOCK_BYTES_CAP = 2 << 20  # ~2 MiB per block (see header note on VMEM budgeting).


def _sublane_multiple(dtype) -> int:
    # f32 -> 8, bf16 -> 16, int8/fp8 -> 32 (sub-32-bit dtypes pack along sublanes).
    itemsize = jnp.dtype(dtype).itemsize
    return max(8, 32 // itemsize)


def _choose_leading_tile(shape, dtype) -> int:
    """Tile size along the leading dim so one (tile, *shape[1:]) block is <= ~2 MiB.

    Trailing dims stay at full extent (always layout-legal, no reshape needed).
    The grid uses pl.cdiv, so a non-divisible leading dim gets a ragged (masked)
    last block instead of a whole-array fallback."""
    lead = shape[0]
    row_bytes = max(1, math.prod(shape[1:]) * jnp.dtype(dtype).itemsize)
    tile = max(1, _BLOCK_BYTES_CAP // row_bytes)
    if len(shape) == 2 and tile < lead:
        # Rank-2: the leading dim is the sublane dim -> keep the tile a sublane
        # multiple (or the full dim) so the block stays layout-legal.
        sub = _sublane_multiple(dtype)
        tile = max(sub, (tile // sub) * sub)
    return min(lead, tile)


def _copy_kernel(x_ref, o_ref):
    # Identical block shapes on both sides: straight vld/vst copy, no layout shuffle.
    o_ref[...] = x_ref[...]


def serve_collate_materialized(sample: jax.Array) -> jax.Array:
    """default_collate([sample]) with an explicit on-device copy into a fresh
    (1, *sample.shape) buffer. Tiles the native sample layout (no lane-flattening
    reshape, hence no HBM relayout around the pallas_call)."""
    if sample.ndim == 0:
        # TODO(synk): scalar payloads have nothing to tile; metadata-only unsqueeze.
        return jnp.expand_dims(sample, 0)
    x = sample if sample.ndim >= 2 else sample[None, :]
    trailing = x.shape[1:]
    tile = _choose_leading_tile(x.shape, x.dtype)
    grid = (pl.cdiv(x.shape[0], tile),)
    nbytes = x.size * jnp.dtype(x.dtype).itemsize

    out = pl.pallas_call(
        _copy_kernel,
        out_shape=jax.ShapeDtypeStruct((1,) + x.shape, x.dtype),
        grid=grid,
        in_specs=[pl.BlockSpec((tile,) + trailing,
                               lambda i: (i,) + (0,) * len(trailing))],
        # Leading batch dim squeezed (None): kernel sees identical in/out blocks.
        out_specs=pl.BlockSpec((None, tile) + trailing,
                               lambda i: (0, i) + (0,) * len(trailing)),
        compiler_params=pltpu.CompilerParams(dimension_semantics=("parallel",)),
        cost_estimate=pl.CostEstimate(flops=0, transcendentals=0,
                                      bytes_accessed=2 * nbytes),
    )(x)
    return out.reshape((1,) + sample.shape)


def _slot_copy_kernel(batch_any_ref, x_ref, o_ref):
    # batch_any_ref is the aliased destination buffer (memory_space=ANY, never
    # DMA'd in); untouched slots keep their existing contents.
    del batch_any_ref
    o_ref[...] = x_ref[...]


@partial(jax.jit, static_argnames=("slot",), donate_argnums=(0,))
def write_sample_into_batch(batch: jax.Array, sample: jax.Array, *, slot: int) -> jax.Array:
    """Serving-loop collate: write `sample` into slot `slot` of a preallocated batch.

    Truly in place: native-shape BlockSpecs (no full-batch reshape / relayout),
    input_output_aliases inside the pallas_call, and buffer donation at the jit
    boundary so XLA reuses the batch allocation end-to-end. Only the target slot's
    blocks are written back to HBM."""
    assert batch.shape[1:] == sample.shape and batch.dtype == sample.dtype
    assert sample.ndim >= 2, "slot writer expects an at-least-2D decoded sample"
    trailing = sample.shape[1:]
    tile = _choose_leading_tile(sample.shape, sample.dtype)
    grid = (pl.cdiv(sample.shape[0], tile),)
    slot_bytes = sample.size * jnp.dtype(sample.dtype).itemsize

    return pl.pallas_call(
        _slot_copy_kernel,
        out_shape=jax.ShapeDtypeStruct(batch.shape, batch.dtype),
        grid=grid,
        in_specs=[
            pl.BlockSpec(memory_space=pl.ANY),  # aliased batch, never DMA'd in
            pl.BlockSpec((tile,) + trailing,
                         lambda i: (i,) + (0,) * len(trailing)),
        ],
        # Leading batch dim squeezed (None); index_map pins it to `slot` so only
        # that slot's blocks are written. Grid iterations are independent ->
        # "parallel" lets v7x shard them across both TensorCores.
        out_specs=pl.BlockSpec((None, tile) + trailing,
                               lambda i: (slot, i) + (0,) * len(trailing)),
        input_output_aliases={0: 0},
        compiler_params=pltpu.CompilerParams(dimension_semantics=("parallel",)),
        cost_estimate=pl.CostEstimate(flops=0, transcendentals=0,
                                      bytes_accessed=2 * slot_bytes),
    )(batch, sample)


def serve_input_processor_forward(sample: jax.Array, *, materialize: bool = False) -> jax.Array:
    """Mirrors _ServeInputProcessor.forward on an already-decoded sample."""
    # _call_load_sample: identity here (decoding is host-side, see TODO above).
    loaded = sample
    if not materialize:
        # default_collate([sample]) == unsqueeze: zero-cost metadata reshape.
        # The best kernel for a pure data-movement op is no kernel.
        return jnp.expand_dims(loaded, 0)
    return serve_collate_materialized(loaded)


if __name__ == "__main__":
    key = jax.random.PRNGKey(0)
    C, H, W = 4, 16, 16
    sample = jax.random.normal(key, (C, H, W), dtype=jnp.float32)

    # 1) Default forward path: metadata-only unsqueeze (no kernel, no HBM traffic).
    batched = serve_input_processor_forward(sample)
    jax.block_until_ready(batched)
    assert batched.shape == (1, C, H, W)
    assert batched.dtype == sample.dtype
    assert bool(jnp.array_equal(batched[0], sample))

    # 2) Materialized collate: native-layout gridded Pallas copy into a fresh buffer.
    batched_mat = serve_input_processor_forward(sample, materialize=True)
    jax.block_until_ready(batched_mat)
    assert batched_mat.shape == (1, C, H, W)
    assert batched_mat.dtype == sample.dtype
    assert bool(jnp.array_equal(batched_mat[0], sample))

    # 3) Serving-loop pattern: fill slot 1 of a preallocated 2-sample batch in place
    #    (aliased + donated; batch0 must not be reused after this call).
    N = 2
    batch0 = jnp.full((N, C, H, W), -1.0, dtype=jnp.float32)
    new_batch = write_sample_into_batch(batch0, sample, slot=1)
    jax.block_until_ready(new_batch)
    assert new_batch.shape == (N, C, H, W)
    assert bool(jnp.array_equal(new_batch[1], sample))   # written slot
    assert bool(jnp.all(new_batch[0] == -1.0))           # untouched slot preserved

    print("KERNEL_OK")
</pallas_src>

<mosaic_0001>
module attributes {stable_mosaic.version = 11 : i64} {
  func.func @_copy_kernel(%arg0: i32, %arg1: memref<4x16x16xf32, #tpu.memory_space<vmem>>, %arg2: memref<1x4x16x16xf32, #tpu.memory_space<vmem>>) attributes {dimension_semantics = [#tpu.dimension_semantics<parallel>], iteration_bounds = array<i64: 1>, scalar_prefetch = 0 : i64, scratch_operands = 0 : i64, tpu.core_type = #tpu.core_type<tc>, window_params = [{transform_indices = @transform_0, window_bounds = array<i64: 4, 16, 16>}, {transform_indices = @transform_1, window_bounds = array<i64: 1, 4, 16, 16>}]} {
    %c0 = arith.constant 0 : index
    %c0_0 = arith.constant 0 : index
    %c0_1 = arith.constant 0 : index
    %0 = vector.load %arg1[%c0, %c0_0, %c0_1] : memref<4x16x16xf32, #tpu.memory_space<vmem>>, vector<4x16x16xf32>
    %c0_2 = arith.constant 0 : index
    %c0_3 = arith.constant 0 : index
    %c0_4 = arith.constant 0 : index
    %c0_5 = arith.constant 0 : index
    %1 = vector.load %arg2[%c0_2, %c0_3, %c0_4, %c0_5] : memref<1x4x16x16xf32, #tpu.memory_space<vmem>>, vector<1x4x16x16xf32>
    %2 = vector.shape_cast %1 : vector<1x4x16x16xf32> to vector<4x16x16xf32>
    %3 = vector.shape_cast %0 : vector<4x16x16xf32> to vector<1x4x16x16xf32>
    tpu.vector_store %arg2[%c0_2, %c0_3, %c0_4, %c0_5], %3 {strides = array<i32>} : memref<1x4x16x16xf32, #tpu.memory_space<vmem>>, vector<1x4x16x16xf32>,
    return
  }
  func.func @transform_0(%arg0: i32) -> (i32, i32, i32) {
    %c0_i32 = arith.constant 0 : i32
    %c0_i32_0 = arith.constant 0 : i32
    %c0_i32_1 = arith.constant 0 : i32
    return %arg0, %c0_i32, %c0_i32_0 : i32, i32, i32
  }
  func.func @transform_1(%arg0: i32) -> (i32, i32, i32, i32) {
    %c0_i32 = arith.constant 0 : i32
    %c0_i32_0 = arith.constant 0 : i32
    %c0_i32_1 = arith.constant 0 : i32
    %c0_i32_2 = arith.constant 0 : i32
    return %c0_i32, %arg0, %c0_i32_0, %c0_i32_1 : i32, i32, i32, i32
  }
}

</mosaic_0001>

<bundles_post_ra>
// kernel: tpu_custom_call.1
= control target key start
LH: loop header
LB: loop body
LE: loop exit
PB: predicated region body
PF: predicated region fallthrough
CT: control target
= control target key end

     0   :  { %6 = vsyncpa [#allocation3], 0  ;;  %s151_s0 = inlined_call_operand.hbm [shape: f32[4,16,16], index: 0, kind: input, shape index: {}]   ;;  %s152_s1 = inlined_call_operand.hbm [shape: f32[1,4,16,16], index: 1, kind: output, shape index: {}]  }
   0x1   :  { %7 = vsyncpa [#allocation4], 0  ;;  %s12_s8 = sshll.u32 %s151_s0, 4  ;;  %s117_s9 = smov [#allocation2]   ;;  %s13_s8 = int_to_ptr.hbm [resolvable:$true] %s12_s8 }
   0x2   :  { %s14_s10 = sshll.u32 %s117_s9, 4  ;;  %s118_s11 = smov 128   ;;  %s15_s10 = int_to_ptr.vmem [resolvable:$true] %s14_s10 }
   0x3   :  { %s119_s12 = smov 8  }
   0x4   :  { %20 = dma.hbm_to_vmem [thread:$0]  %s13_s8, 1024, %s15_s10, [#allocation3], %s118_s11, %s118_s11, %s119_s12  }
   0x5   :  { %113 = dma.done.wait [#allocation3], 1024  }
   0x6   :  { %114 = vsyncadd [#allocation3], 4294966272  ;;  %vm33_vm0 = vcmask 130048   ;;  %v25_v0 = vld [vmem:[#allocation2] sm:$0xff]  ;;  %v26_v1 = vld [vmem:[#allocation2 + $0x8] sm:$0xff]  ;;  %s120_s0 = smov [#allocation5]  }
   0x7   :  { %v27_v2 = vld [vmem:[#allocation2 + $0x10] sm:$0xff]  ;;  %34 = vst.msk [vmem:[#allocation5] sm:$0xff] %vm33_vm0, %v25_v0  ;;  %v28_v3 = vld [vmem:[#allocation2 + $0x18] sm:$0xff]  ;;  %v29_v4 = vld [vmem:[#allocation2 + $0x20] sm:$0xff]  ;;  %s46_s13 = sshll.u32 %s120_s0, 4  ;;  %s48_s16 = sshll.u32 %s152_s1, 4  ;;  %s47_s13 = int_to_ptr.vmem [resolvable:$true] %s46_s13  ;;  %s49_s16 = int_to_ptr.hbm [resolvable:$true] %s48_s16 }
   0x8   :  { %35 = vst.msk [vmem:[#allocation5 + $0x8] sm:$0xff] %vm33_vm0, %v26_v1  ;;  %v30_v5 = vld [vmem:[#allocation2 + $0x28] sm:$0xff]  ;;  %v31_v6 = vld [vmem:[#allocation2 + $0x30] sm:$0xff]  ;;  %v32_v7 = vld [vmem:[#allocation2 + $0x38] sm:$0xff] }
   0x9   :  { %36 = vst.msk [vmem:[#allocation5 + $0x10] sm:$0xff] %vm33_vm0, %v27_v2 }
   0xa   :  { %37 = vst.msk [vmem:[#allocation5 + $0x18] sm:$0xff] %vm33_vm0, %v28_v3 }
   0xb   :  { %38 = vst.msk [vmem:[#allocation5 + $0x20] sm:$0xff] %vm33_vm0, %v29_v4 }
   0xc   :  { %39 = vst.msk [vmem:[#allocation5 + $0x28] sm:$0xff] %vm33_vm0, %v30_v5 }
   0xd   :  { %40 = vst.msk [vmem:[#allocation5 + $0x30] sm:$0xff] %vm33_vm0, %v31_v6 }
   0xe   :  { %41 = vst.msk [vmem:[#allocation5 + $0x38] sm:$0xff] %vm33_vm0, %v32_v7 }
   0xf   :  { %54 = dma.vmem_to_hbm [thread:$0]  %s47_s13, 1024, %s49_s16, [#allocation4], %s118_s11, %s118_s11, %s119_s12  }
  0x10   :  { %115 = dma.done.wait [#allocation4], 1024  }
  0x11   :  { %116 = vsyncadd [#allocation4], 4294966272 }
  0x12   :  { %59 = vsyncpa [#allocation3], 1 }
  0x13   :  { %60 = vsyncpa [#allocation4], 1 }

</bundles_post_ra>
